<compile_context>
chip_gen: v6e
topology: v6e:2x2x1
jax: 0.10.0
libtpu: 0.0.40
codegen_flags: <defaults>
</compile_context>

<pallas_src>
import functools

import jax
import jax.numpy as jnp
from jax import lax
from jax.experimental import pallas as pl
from jax.experimental.pallas import tpu as pltpu


# ----------------------------------------------------------------------------
# Kernel 1: fused multi-head attention + output projection + residual + LayerNorm
#   grid = (N, num_q_tiles, heads); heads is the innermost reduction axis.
# ----------------------------------------------------------------------------
def _attn_ln_kernel(v_ref, k_ref, q_ref, res_ref, mask_ref,
                    wv_ref, wk_ref, wq_ref, wo_ref, bo_ref, g_ref, be_ref,
                    o_ref, acc_ref, *, scale, eps):
    h = pl.program_id(2)

    @pl.when(h == 0)
    def _():
        acc_ref[...] = jnp.zeros_like(acc_ref)

    v_in = v_ref[0].astype(jnp.bfloat16)      # (Lkv, E)
    k_in = k_ref[0].astype(jnp.bfloat16)      # (Lkv, E)
    q_in = q_ref[0].astype(jnp.bfloat16)      # (Tq,  E)

    wv = wv_ref[0]                            # (E, d)  bf16, pre-transposed
    wk = wk_ref[0]                            # (E, d)
    wq = wq_ref[0]                            # (E, d)
    wo = wo_ref[0]                            # (d, E)

    # per-head projections (x @ W form, bf16 in / f32 accumulate)
    vh = jnp.dot(v_in, wv, preferred_element_type=jnp.float32)   # (Lkv, d)
    kh = jnp.dot(k_in, wk, preferred_element_type=jnp.float32)   # (Lkv, d)
    qh = jnp.dot(q_in, wq, preferred_element_type=jnp.float32)   # (Tq,  d)

    # energy = Q K^T without materializing a transpose
    energy = lax.dot_general(
        qh.astype(jnp.bfloat16), kh.astype(jnp.bfloat16),
        dimension_numbers=(((1,), (1,)), ((), ())),
        preferred_element_type=jnp.float32)                      # (Tq, Lkv)

    mask = mask_ref[0, 0]                                        # (Tq, Lkv)
    # NOTE: -1e-20 faithfully reproduces the reference module (masked_fill with
    # -1e-20 before scaling); exp(-1e-20) ~ 1, exactly as in the PyTorch code.
    energy = jnp.where(mask == 0, jnp.float32(-1e-20), energy)
    energy = energy * scale

    m = jnp.max(energy, axis=-1, keepdims=True)
    e = jnp.exp(energy - m)
    attn = e * pl.reciprocal(jnp.sum(e, axis=-1, keepdims=True), approx=True)

    ctx = jnp.dot(attn.astype(jnp.bfloat16), vh.astype(jnp.bfloat16),
                  preferred_element_type=jnp.float32)            # (Tq, d)
    # accumulate this head's slice of the output projection
    acc_ref[...] += jnp.dot(ctx.astype(jnp.bfloat16), wo,
                            preferred_element_type=jnp.float32)  # (Tq, E)

    @pl.when(h == pl.num_programs(2) - 1)
    def _():
        x = acc_ref[...] + bo_ref[...] + res_ref[0]              # fused residual
        mu = jnp.mean(x, axis=-1, keepdims=True)
        var = jnp.mean((x - mu) ** 2, axis=-1, keepdims=True)    # biased, like torch
        o_ref[0] = (x - mu) * lax.rsqrt(var + eps) * g_ref[...] + be_ref[...]


def attention_add_layernorm(values, keys, query, residual, mask, p, gamma, beta,
                            *, heads, eps=1e-5, q_tile=256):
    """LN(SelfAttention(values, keys, query, mask) + residual) * gamma + beta."""
    N, Lq, E = query.shape
    Lkv = keys.shape[1]
    d = E // heads
    scale = 1.0 / float(d) ** 0.5

    # Pre-split / pre-transpose weights ONCE in the wrapper (XLA, outside kernel):
    # params are stored (in,out) so x @ W matches PyTorch's x @ W.T.
    wq3 = p["wq"].reshape(E, heads, d).transpose(1, 0, 2).astype(jnp.bfloat16)  # (H,E,d)
    wk3 = p["wk"].reshape(E, heads, d).transpose(1, 0, 2).astype(jnp.bfloat16)
    wv3 = p["wv"].reshape(E, heads, d).transpose(1, 0, 2).astype(jnp.bfloat16)
    wo3 = p["wo"].reshape(heads, d, E).astype(jnp.bfloat16)                     # (H,d,E)
    bo = p["bo"]

    tq = min(Lq, q_tile)
    nq = pl.cdiv(Lq, tq)
    kern = functools.partial(_attn_ln_kernel, scale=scale, eps=eps)

    return pl.pallas_call(
        kern,
        out_shape=jax.ShapeDtypeStruct((N, Lq, E), jnp.float32),
        grid_spec=pltpu.PrefetchScalarGridSpec(
            num_scalar_prefetch=0,
            grid=(N, nq, heads),
            in_specs=[
                pl.BlockSpec((1, Lkv, E), lambda n, qi, h: (n, 0, 0)),       # values
                pl.BlockSpec((1, Lkv, E), lambda n, qi, h: (n, 0, 0)),       # keys
                pl.BlockSpec((1, tq, E),  lambda n, qi, h: (n, qi, 0)),      # query
                pl.BlockSpec((1, tq, E),  lambda n, qi, h: (n, qi, 0)),      # residual
                pl.BlockSpec((1, 1, tq, Lkv), lambda n, qi, h: (n, 0, qi, 0)),  # mask
                pl.BlockSpec((1, E, d), lambda n, qi, h: (h, 0, 0)),         # Wv head
                pl.BlockSpec((1, E, d), lambda n, qi, h: (h, 0, 0)),         # Wk head
                pl.BlockSpec((1, E, d), lambda n, qi, h: (h, 0, 0)),         # Wq head
                pl.BlockSpec((1, d, E), lambda n, qi, h: (h, 0, 0)),         # Wo head
                pl.BlockSpec((1, E), lambda n, qi, h: (0, 0)),               # bo
                pl.BlockSpec((1, E), lambda n, qi, h: (0, 0)),               # gamma
                pl.BlockSpec((1, E), lambda n, qi, h: (0, 0)),               # beta
            ],
            out_specs=pl.BlockSpec((1, tq, E), lambda n, qi, h: (n, qi, 0)),
            scratch_shapes=[pltpu.VMEM((tq, E), jnp.float32)],
        ),
        compiler_params=pltpu.CompilerParams(
            dimension_semantics=("parallel", "parallel", "arbitrary")),
    )(values, keys, query, residual, mask, wv3, wk3, wq3, wo3, bo, gamma, beta)


# ----------------------------------------------------------------------------
# Kernel 2: fused FFN (Linear -> ReLU -> Linear) + residual + LayerNorm
#   runs on flattened (N*L, E) rows; grid over row tiles (no batch grid).
# ----------------------------------------------------------------------------
def _ffn_ln_kernel(x_ref, w1_ref, b1_ref, w2_ref, b2_ref, g_ref, be_ref, o_ref,
                   *, eps):
    x = x_ref[...]                                                # (R, E) f32
    hid = jnp.dot(x.astype(jnp.bfloat16), w1_ref[...],
                  preferred_element_type=jnp.float32) + b1_ref[...]
    hid = jnp.maximum(hid, 0.0)
    f = jnp.dot(hid.astype(jnp.bfloat16), w2_ref[...],
                preferred_element_type=jnp.float32) + b2_ref[...]
    y = f + x                                                     # fused residual
    mu = jnp.mean(y, axis=-1, keepdims=True)
    var = jnp.mean((y - mu) ** 2, axis=-1, keepdims=True)
    o_ref[...] = (y - mu) * lax.rsqrt(var + eps) * g_ref[...] + be_ref[...]


def ffn_add_layernorm(x, w1, b1, w2, b2, gamma, beta, *, eps=1e-5, row_tile=256):
    """LN(FFN(x) + x) * gamma + beta, with (N,L) folded into one row axis."""
    N, L, E = x.shape
    H = w1.shape[1]
    rows = N * L
    x2 = x.reshape(rows, E)
    w1b = w1.astype(jnp.bfloat16)    # (E, H), pre-transposed (x @ W layout)
    w2b = w2.astype(jnp.bfloat16)    # (H, E)

    rt = min(rows, row_tile)
    grid = (pl.cdiv(rows, rt),)
    kern = functools.partial(_ffn_ln_kernel, eps=eps)

    out = pl.pallas_call(
        kern,
        out_shape=jax.ShapeDtypeStruct((rows, E), jnp.float32),
        grid_spec=pltpu.PrefetchScalarGridSpec(
            num_scalar_prefetch=0,
            grid=grid,
            in_specs=[
                pl.BlockSpec((rt, E), lambda r: (r, 0)),
                pl.BlockSpec((E, H), lambda r: (0, 0)),
                pl.BlockSpec((1, H), lambda r: (0, 0)),
                pl.BlockSpec((H, E), lambda r: (0, 0)),
                pl.BlockSpec((1, E), lambda r: (0, 0)),
                pl.BlockSpec((1, E), lambda r: (0, 0)),
                pl.BlockSpec((1, E), lambda r: (0, 0)),
            ],
            out_specs=pl.BlockSpec((rt, E), lambda r: (r, 0)),
        ),
        compiler_params=pltpu.CompilerParams(dimension_semantics=("parallel",)),
    )(x2, w1b, b1, w2b, b2, gamma, beta)
    return out.reshape(N, L, E)


# ----------------------------------------------------------------------------
# DecoderBlock forward (composition of the two fused Pallas kernels)
# ----------------------------------------------------------------------------
def decoder_block_forward(params, x, value, key, src_mask, tgt_mask, *, heads):
    # attention = SelfAttention(x, x, x, tgt_mask); query = dropout(norm(attention + x))
    # TODO(synk): nn.Dropout has no deterministic Pallas equivalent; identity (eval mode).
    query = attention_add_layernorm(
        x, x, x, x, tgt_mask, params["self_attn"],
        params["norm_g"], params["norm_b"], heads=heads)

    # ---- TransformerBlock(value, key, query, src_mask) ----
    t = attention_add_layernorm(
        value, key, query, query, src_mask, params["cross_attn"],
        params["norm1_g"], params["norm1_b"], heads=heads)
    out = ffn_add_layernorm(
        t, params["ff_w1"], params["ff_b1"], params["ff_w2"], params["ff_b2"],
        params["norm2_g"], params["norm2_b"])
    return out


# ----------------------------------------------------------------------------
# Deterministic parameter init (weights stored in (in, out) = x @ W layout)
# ----------------------------------------------------------------------------
def init_params(key, embed_size, heads, forward_expansion):
    E = embed_size
    H = forward_expansion * E
    ks = jax.random.split(key, 8)
    scale = 1.0 / jnp.sqrt(E)

    def attn_params(k4):
        k = jax.random.split(k4, 5)
        return {
            "wq": jax.random.normal(k[0], (E, E), jnp.float32) * scale,
            "wk": jax.random.normal(k[1], (E, E), jnp.float32) * scale,
            "wv": jax.random.normal(k[2], (E, E), jnp.float32) * scale,
            "wo": jax.random.normal(k[3], (E, E), jnp.float32) * scale,
            "bo": jax.random.normal(k[4], (1, E), jnp.float32) * 0.01,
        }

    return {
        "self_attn": attn_params(ks[0]),
        "cross_attn": attn_params(ks[1]),
        "norm_g": jnp.ones((1, E), jnp.float32),
        "norm_b": jnp.zeros((1, E), jnp.float32),
        "norm1_g": jnp.ones((1, E), jnp.float32),
        "norm1_b": jnp.zeros((1, E), jnp.float32),
        "norm2_g": jnp.ones((1, E), jnp.float32),
        "norm2_b": jnp.zeros((1, E), jnp.float32),
        "ff_w1": jax.random.normal(ks[2], (E, H), jnp.float32) * scale,
        "ff_b1": jax.random.normal(ks[3], (1, H), jnp.float32) * 0.01,
        "ff_w2": jax.random.normal(ks[4], (H, E), jnp.float32) * (1.0 / jnp.sqrt(H)),
        "ff_b2": jax.random.normal(ks[5], (1, E), jnp.float32) * 0.01,
    }


if __name__ == "__main__":
    N, L, E = 2, 8, 32
    HEADS = 4
    FWD_EXP = 4

    root = jax.random.PRNGKey(0)
    k_p, k_x, k_v, k_k = jax.random.split(root, 4)

    params = init_params(k_p, E, HEADS, FWD_EXP)

    x = jax.random.normal(k_x, (N, L, E), jnp.float32)        # decoder input
    value = jax.random.normal(k_v, (N, L, E), jnp.float32)    # encoder output (V)
    key = jax.random.normal(k_k, (N, L, E), jnp.float32)      # encoder output (K)

    # tgt_mask: causal (N, 1, L, L); src_mask: all ones (N, 1, L, L)
    causal = jnp.tril(jnp.ones((L, L), jnp.float32))
    tgt_mask = jnp.broadcast_to(causal, (N, 1, L, L)).astype(jnp.float32)
    src_mask = jnp.ones((N, 1, L, L), jnp.float32)

    fwd = jax.jit(functools.partial(decoder_block_forward, heads=HEADS))
    out = fwd(params, x, value, key, src_mask, tgt_mask)
    jax.block_until_ready(out)

    assert out.shape == (N, L, E), out.shape
    assert jnp.all(jnp.isfinite(out)), "non-finite output"
    print("KERNEL_OK")
</pallas_src>

<mosaic_0001>
module attributes {stable_mosaic.version = 11 : i64} {
  func.func @_attn_ln_kernel(%arg0: i32, %arg1: i32, %arg2: i32, %arg3: memref<1x8x32xf32, #tpu.memory_space<vmem>>, %arg4: memref<1x8x32xf32, #tpu.memory_space<vmem>>, %arg5: memref<1x8x32xf32, #tpu.memory_space<vmem>>, %arg6: memref<1x8x32xf32, #tpu.memory_space<vmem>>, %arg7: memref<1x1x8x8xf32, #tpu.memory_space<vmem>>, %arg8: memref<1x32x8xbf16, #tpu.memory_space<vmem>>, %arg9: memref<1x32x8xbf16, #tpu.memory_space<vmem>>, %arg10: memref<1x32x8xbf16, #tpu.memory_space<vmem>>, %arg11: memref<1x8x32xbf16, #tpu.memory_space<vmem>>, %arg12: memref<1x32xf32, #tpu.memory_space<vmem>>, %arg13: memref<1x32xf32, #tpu.memory_space<vmem>>, %arg14: memref<1x32xf32, #tpu.memory_space<vmem>>, %arg15: memref<1x8x32xf32, #tpu.memory_space<vmem>>, %arg16: memref<8x32xf32, #tpu.memory_space<vmem>>) attributes {dimension_semantics = [#tpu.dimension_semantics<parallel>, #tpu.dimension_semantics<parallel>, #tpu.dimension_semantics<arbitrary>], iteration_bounds = array<i64: 2, 1, 4>, scalar_prefetch = 0 : i64, scratch_operands = 1 : i64, tpu.core_type = #tpu.core_type<tc>, window_params = [{transform_indices = @transform_0, window_bounds = array<i64: 1, 8, 32>}, {transform_indices = @transform_1, window_bounds = array<i64: 1, 8, 32>}, {transform_indices = @transform_2, window_bounds = array<i64: 1, 8, 32>}, {transform_indices = @transform_3, window_bounds = array<i64: 1, 8, 32>}, {transform_indices = @transform_4, window_bounds = array<i64: 1, 1, 8, 8>}, {transform_indices = @transform_5, window_bounds = array<i64: 1, 32, 8>}, {transform_indices = @transform_6, window_bounds = array<i64: 1, 32, 8>}, {transform_indices = @transform_7, window_bounds = array<i64: 1, 32, 8>}, {transform_indices = @transform_8, window_bounds = array<i64: 1, 8, 32>}, {pipeline_mode = #tpu.pipeline_mode<synchronous>, transform_indices = @transform_9, window_bounds = array<i64: 1, 32>}, {pipeline_mode = #tpu.pipeline_mode<synchronous>, transform_indices = @transform_10, window_bounds = array<i64: 1, 32>}, {pipeline_mode = #tpu.pipeline_mode<synchronous>, transform_indices = @transform_11, window_bounds = array<i64: 1, 32>}, {transform_indices = @transform_12, window_bounds = array<i64: 1, 8, 32>}]} {
    %c0_i32 = arith.constant 0 : i32
    %0 = arith.cmpi eq, %arg2, %c0_i32 : i32
    %1 = arith.extui %0 : i1 to i32
    %c0_i32_0 = arith.constant 0 : i32
    %2 = arith.cmpi ne, %1, %c0_i32_0 : i32
    scf.if %2 {
      %cst_40 = arith.constant 0.000000e+00 : f32
      %55 = vector.broadcast %cst_40 : f32 to vector<8x32xf32>
      %c0_41 = arith.constant 0 : index
      %c0_42 = arith.constant 0 : index
      %56 = vector.load %arg16[%c0_41, %c0_42] : memref<8x32xf32, #tpu.memory_space<vmem>>, vector<8x32xf32>
      tpu.vector_store %arg16[%c0_41, %c0_42], %55 {strides = array<i32>} : memref<8x32xf32, #tpu.memory_space<vmem>>, vector<8x32xf32>,
    } else {
    }
    %c0 = arith.constant 0 : index
    %c0_1 = arith.constant 0 : index
    %c0_2 = arith.constant 0 : index
    %3 = vector.load %arg3[%c0, %c0_1, %c0_2] : memref<1x8x32xf32, #tpu.memory_space<vmem>>, vector<1x8x32xf32>
    %4 = vector.shape_cast %3 : vector<1x8x32xf32> to vector<8x32xf32>
    %5 = arith.truncf %4 : vector<8x32xf32> to vector<8x32xbf16>
    %c0_3 = arith.constant 0 : index
    %c0_4 = arith.constant 0 : index
    %c0_5 = arith.constant 0 : index
    %6 = vector.load %arg4[%c0_3, %c0_4, %c0_5] : memref<1x8x32xf32, #tpu.memory_space<vmem>>, vector<1x8x32xf32>
    %7 = vector.shape_cast %6 : vector<1x8x32xf32> to vector<8x32xf32>
    %8 = arith.truncf %7 : vector<8x32xf32> to vector<8x32xbf16>
    %c0_6 = arith.constant 0 : index
    %c0_7 = arith.constant 0 : index
    %c0_8 = arith.constant 0 : index
    %9 = vector.load %arg5[%c0_6, %c0_7, %c0_8] : memref<1x8x32xf32, #tpu.memory_space<vmem>>, vector<1x8x32xf32>
    %10 = vector.shape_cast %9 : vector<1x8x32xf32> to vector<8x32xf32>
    %11 = arith.truncf %10 : vector<8x32xf32> to vector<8x32xbf16>
    %c0_9 = arith.constant 0 : index
    %c0_10 = arith.constant 0 : index
    %c0_11 = arith.constant 0 : index
    %12 = vector.load %arg8[%c0_9, %c0_10, %c0_11] : memref<1x32x8xbf16, #tpu.memory_space<vmem>>, vector<1x32x8xbf16>
    %13 = vector.shape_cast %12 : vector<1x32x8xbf16> to vector<32x8xbf16>
    %c0_12 = arith.constant 0 : index
    %c0_13 = arith.constant 0 : index
    %c0_14 = arith.constant 0 : index
    %14 = vector.load %arg9[%c0_12, %c0_13, %c0_14] : memref<1x32x8xbf16, #tpu.memory_space<vmem>>, vector<1x32x8xbf16>
    %15 = vector.shape_cast %14 : vector<1x32x8xbf16> to vector<32x8xbf16>
    %c0_15 = arith.constant 0 : index
    %c0_16 = arith.constant 0 : index
    %c0_17 = arith.constant 0 : index
    %16 = vector.load %arg10[%c0_15, %c0_16, %c0_17] : memref<1x32x8xbf16, #tpu.memory_space<vmem>>, vector<1x32x8xbf16>
    %17 = vector.shape_cast %16 : vector<1x32x8xbf16> to vector<32x8xbf16>
    %c0_18 = arith.constant 0 : index
    %c0_19 = arith.constant 0 : index
    %c0_20 = arith.constant 0 : index
    %18 = vector.load %arg11[%c0_18, %c0_19, %c0_20] : memref<1x8x32xbf16, #tpu.memory_space<vmem>>, vector<1x8x32xbf16>
    %19 = vector.shape_cast %18 : vector<1x8x32xbf16> to vector<8x32xbf16>
    %cst = arith.constant dense<0.000000e+00> : vector<8x8xf32>
    %20 = tpu.matmul %5, %13, %cst {dimension_numbers = #tpu.dot_dimension_numbers<[1], [0], [0], [1], [0, 0, 1, 1], [], []>} : vector<8x32xbf16>, vector<32x8xbf16>, vector<8x8xf32> -> vector<8x8xf32>
    %cst_21 = arith.constant dense<0.000000e+00> : vector<8x8xf32>
    %21 = tpu.matmul %8, %15, %cst_21 {dimension_numbers = #tpu.dot_dimension_numbers<[1], [0], [0], [1], [0, 0, 1, 1], [], []>} : vector<8x32xbf16>, vector<32x8xbf16>, vector<8x8xf32> -> vector<8x8xf32>
    %cst_22 = arith.constant dense<0.000000e+00> : vector<8x8xf32>
    %22 = tpu.matmul %11, %17, %cst_22 {dimension_numbers = #tpu.dot_dimension_numbers<[1], [0], [0], [1], [0, 0, 1, 1], [], []>} : vector<8x32xbf16>, vector<32x8xbf16>, vector<8x8xf32> -> vector<8x8xf32>
    %23 = arith.truncf %22 : vector<8x8xf32> to vector<8x8xbf16>
    %24 = arith.truncf %21 : vector<8x8xf32> to vector<8x8xbf16>
    %cst_23 = arith.constant dense<0.000000e+00> : vector<8x8xf32>
    %25 = tpu.matmul %23, %24, %cst_23 {dimension_numbers = #tpu.dot_dimension_numbers<[1], [1], [0], [0], [0, 0, 1, 0], [], []>} : vector<8x8xbf16>, vector<8x8xbf16>, vector<8x8xf32> -> vector<8x8xf32>
    %c0_24 = arith.constant 0 : index
    %c0_25 = arith.constant 0 : index
    %c0_26 = arith.constant 0 : index
    %c0_27 = arith.constant 0 : index
    %26 = vector.load %arg7[%c0_24, %c0_25, %c0_26, %c0_27] : memref<1x1x8x8xf32, #tpu.memory_space<vmem>>, vector<1x1x8x8xf32>
    %27 = vector.shape_cast %26 : vector<1x1x8x8xf32> to vector<8x8xf32>
    %cst_28 = arith.constant 0.000000e+00 : f32
    %28 = vector.broadcast %cst_28 : f32 to vector<8x8xf32>
    %29 = arith.cmpf oeq, %27, %28 : vector<8x8xf32>
    %cst_29 = arith.constant -9.99999968E-21 : f32
    %30 = vector.broadcast %cst_29 : f32 to vector<8x8xf32>
    %31 = arith.select %29, %30, %25 : vector<8x8xi1>, vector<8x8xf32>
    %cst_30 = arith.constant 0.353553385 : f32
    %32 = vector.broadcast %cst_30 : f32 to vector<8x8xf32>
    %33 = arith.mulf %31, %32 : vector<8x8xf32>
    %cst_31 = arith.constant dense<0xFF800000> : vector<8xf32>
    %34 = vector.multi_reduction <maximumf>, %33, %cst_31 [1] : vector<8x8xf32> to vector<8xf32>
    %35 = vector.shape_cast %34 : vector<8xf32> to vector<8x1xf32>
    %36 = vector.broadcast %35 : vector<8x1xf32> to vector<8x8xf32>
    %37 = arith.subf %33, %36 : vector<8x8xf32>
    %38 = math.exp %37 : vector<8x8xf32>
    %cst_32 = arith.constant dense<0.000000e+00> : vector<8xf32>
    %39 = vector.multi_reduction <add>, %38, %cst_32 [1] : vector<8x8xf32> to vector<8xf32>
    %40 = vector.shape_cast %39 : vector<8xf32> to vector<8x1xf32>
    %41 = tpu.reciprocal %40 {approx = true} : vector<8x1xf32> -> vector<8x1xf32>
    %42 = vector.broadcast %41 : vector<8x1xf32> to vector<8x8xf32>
    %43 = arith.mulf %38, %42 : vector<8x8xf32>
    %44 = arith.truncf %43 : vector<8x8xf32> to vector<8x8xbf16>
    %45 = arith.truncf %20 : vector<8x8xf32> to vector<8x8xbf16>
    %cst_33 = arith.constant dense<0.000000e+00> : vector<8x8xf32>
    %46 = tpu.matmul %44, %45, %cst_33 {dimension_numbers = #tpu.dot_dimension_numbers<[1], [0], [0], [1], [0, 0, 1, 1], [], []>} : vector<8x8xbf16>, vector<8x8xbf16>, vector<8x8xf32> -> vector<8x8xf32>
    %c0_34 = arith.constant 0 : index
    %c0_35 = arith.constant 0 : index
    %47 = vector.load %arg16[%c0_34, %c0_35] : memref<8x32xf32, #tpu.memory_space<vmem>>, vector<8x32xf32>
    %48 = arith.truncf %46 : vector<8x8xf32> to vector<8x8xbf16>
    %cst_36 = arith.constant dense<0.000000e+00> : vector<8x32xf32>
    %49 = tpu.matmul %48, %19, %cst_36 {dimension_numbers = #tpu.dot_dimension_numbers<[1], [0], [0], [1], [0, 0, 1, 1], [], []>} : vector<8x8xbf16>, vector<8x32xbf16>, vector<8x32xf32> -> vector<8x32xf32>
    %50 = arith.addf %47, %49 : vector<8x32xf32>
    %c0_37 = arith.constant 0 : index
    %c0_38 = arith.constant 0 : index
    %51 = vector.load %arg16[%c0_37, %c0_38] : memref<8x32xf32, #tpu.memory_space<vmem>>, vector<8x32xf32>
    tpu.vector_store %arg16[%c0_37, %c0_38], %50 {strides = array<i32>} : memref<8x32xf32, #tpu.memory_space<vmem>>, vector<8x32xf32>,
    %c3_i32 = arith.constant 3 : i32
    %52 = arith.cmpi eq, %arg2, %c3_i32 : i32
    %53 = arith.extui %52 : i1 to i32
    %c0_i32_39 = arith.constant 0 : i32
    %54 = arith.cmpi ne, %53, %c0_i32_39 : i32
    scf.if %54 {
      %c0_40 = arith.constant 0 : index
      %c0_41 = arith.constant 0 : index
      %55 = vector.load %arg16[%c0_40, %c0_41] : memref<8x32xf32, #tpu.memory_space<vmem>>, vector<8x32xf32>
      %c0_42 = arith.constant 0 : index
      %c0_43 = arith.constant 0 : index
      %56 = vector.load %arg12[%c0_42, %c0_43] : memref<1x32xf32, #tpu.memory_space<vmem>>, vector<1x32xf32>
      %57 = vector.broadcast %56 : vector<1x32xf32> to vector<8x32xf32>
      %58 = arith.addf %55, %57 : vector<8x32xf32>
      %c0_44 = arith.constant 0 : index
      %c0_45 = arith.constant 0 : index
      %c0_46 = arith.constant 0 : index
      %59 = vector.load %arg6[%c0_44, %c0_45, %c0_46] : memref<1x8x32xf32, #tpu.memory_space<vmem>>, vector<1x8x32xf32>
      %60 = vector.shape_cast %59 : vector<1x8x32xf32> to vector<8x32xf32>
      %61 = arith.addf %58, %60 : vector<8x32xf32>
      %cst_47 = arith.constant dense<0.000000e+00> : vector<8xf32>
      %62 = vector.multi_reduction <add>, %61, %cst_47 [1] : vector<8x32xf32> to vector<8xf32>
      %63 = vector.shape_cast %62 : vector<8xf32> to vector<8x1xf32>
      %cst_48 = arith.constant 3.200000e+01 : f32
      %64 = vector.broadcast %cst_48 : f32 to vector<8x1xf32>
      %65 = arith.divf %63, %64 : vector<8x1xf32>
      %66 = vector.broadcast %65 : vector<8x1xf32> to vector<8x32xf32>
      %67 = arith.subf %61, %66 : vector<8x32xf32>
      %68 = arith.mulf %67, %67 : vector<8x32xf32>
      %cst_49 = arith.constant dense<0.000000e+00> : vector<8xf32>
      %69 = vector.multi_reduction <add>, %68, %cst_49 [1] : vector<8x32xf32> to vector<8xf32>
      %70 = vector.shape_cast %69 : vector<8xf32> to vector<8x1xf32>
      %cst_50 = arith.constant 3.200000e+01 : f32
      %71 = vector.broadcast %cst_50 : f32 to vector<8x1xf32>
      %72 = arith.divf %70, %71 : vector<8x1xf32>
      %73 = vector.broadcast %65 : vector<8x1xf32> to vector<8x32xf32>
      %74 = arith.subf %61, %73 : vector<8x32xf32>
      %cst_51 = arith.constant 9.99999974E-6 : f32
      %75 = vector.broadcast %cst_51 : f32 to vector<8x1xf32>
      %76 = arith.addf %72, %75 : vector<8x1xf32>
      %77 = math.rsqrt %76 : vector<8x1xf32>
      %78 = vector.broadcast %77 : vector<8x1xf32> to vector<8x32xf32>
      %79 = arith.mulf %74, %78 : vector<8x32xf32>
      %c0_52 = arith.constant 0 : index
      %c0_53 = arith.constant 0 : index
      %80 = vector.load %arg13[%c0_52, %c0_53] : memref<1x32xf32, #tpu.memory_space<vmem>>, vector<1x32xf32>
      %81 = vector.broadcast %80 : vector<1x32xf32> to vector<8x32xf32>
      %82 = arith.mulf %79, %81 : vector<8x32xf32>
      %c0_54 = arith.constant 0 : index
      %c0_55 = arith.constant 0 : index
      %83 = vector.load %arg14[%c0_54, %c0_55] : memref<1x32xf32, #tpu.memory_space<vmem>>, vector<1x32xf32>
      %84 = vector.broadcast %83 : vector<1x32xf32> to vector<8x32xf32>
      %85 = arith.addf %82, %84 : vector<8x32xf32>
      %c0_56 = arith.constant 0 : index
      %c0_57 = arith.constant 0 : index
      %c0_58 = arith.constant 0 : index
      %86 = vector.load %arg15[%c0_56, %c0_57, %c0_58] : memref<1x8x32xf32, #tpu.memory_space<vmem>>, vector<1x8x32xf32>
      %87 = vector.shape_cast %86 : vector<1x8x32xf32> to vector<8x32xf32>
      %88 = vector.shape_cast %85 : vector<8x32xf32> to vector<1x8x32xf32>
      tpu.vector_store %arg15[%c0_56, %c0_57, %c0_58], %88 {strides = array<i32>} : memref<1x8x32xf32, #tpu.memory_space<vmem>>, vector<1x8x32xf32>,
    } else {
    }
    return
  }
  func.func @transform_0(%arg0: i32, %arg1: i32, %arg2: i32) -> (i32, i32, i32) {
    %c0_i32 = arith.constant 0 : i32
    %c0_i32_0 = arith.constant 0 : i32
    %c0_i32_1 = arith.constant 0 : i32
    return %arg0, %c0_i32, %c0_i32_0 : i32, i32, i32
  }
  func.func @transform_1(%arg0: i32, %arg1: i32, %arg2: i32) -> (i32, i32, i32) {
    %c0_i32 = arith.constant 0 : i32
    %c0_i32_0 = arith.constant 0 : i32
    %c0_i32_1 = arith.constant 0 : i32
    return %arg0, %c0_i32, %c0_i32_0 : i32, i32, i32
  }
  func.func @transform_2(%arg0: i32, %arg1: i32, %arg2: i32) -> (i32, i32, i32) {
    %c0_i32 = arith.constant 0 : i32
    %c0_i32_0 = arith.constant 0 : i32
    return %arg0, %arg1, %c0_i32 : i32, i32, i32
  }
  func.func @transform_3(%arg0: i32, %arg1: i32, %arg2: i32) -> (i32, i32, i32) {
    %c0_i32 = arith.constant 0 : i32
    %c0_i32_0 = arith.constant 0 : i32
    return %arg0, %arg1, %c0_i32 : i32, i32, i32
  }
  func.func @transform_4(%arg0: i32, %arg1: i32, %arg2: i32) -> (i32, i32, i32, i32) {
    %c0_i32 = arith.constant 0 : i32
    %c0_i32_0 = arith.constant 0 : i32
    %c0_i32_1 = arith.constant 0 : i32
    return %arg0, %c0_i32, %arg1, %c0_i32_0 : i32, i32, i32, i32
  }
  func.func @transform_5(%arg0: i32, %arg1: i32, %arg2: i32) -> (i32, i32, i32) {
    %c0_i32 = arith.constant 0 : i32
    %c0_i32_0 = arith.constant 0 : i32
    %c0_i32_1 = arith.constant 0 : i32
    return %arg2, %c0_i32, %c0_i32_0 : i32, i32, i32
  }
  func.func @transform_6(%arg0: i32, %arg1: i32, %arg2: i32) -> (i32, i32, i32) {
    %c0_i32 = arith.constant 0 : i32
    %c0_i32_0 = arith.constant 0 : i32
    %c0_i32_1 = arith.constant 0 : i32
    return %arg2, %c0_i32, %c0_i32_0 : i32, i32, i32
  }
  func.func @transform_7(%arg0: i32, %arg1: i32, %arg2: i32) -> (i32, i32, i32) {
    %c0_i32 = arith.constant 0 : i32
    %c0_i32_0 = arith.constant 0 : i32
    %c0_i32_1 = arith.constant 0 : i32
    return %arg2, %c0_i32, %c0_i32_0 : i32, i32, i32
  }
  func.func @transform_8(%arg0: i32, %arg1: i32, %arg2: i32) -> (i32, i32, i32) {
    %c0_i32 = arith.constant 0 : i32
    %c0_i32_0 = arith.constant 0 : i32
    %c0_i32_1 = arith.constant 0 : i32
    return %arg2, %c0_i32, %c0_i32_0 : i32, i32, i32
  }
  func.func @transform_9(%arg0: i32, %arg1: i32, %arg2: i32) -> (i32, i32) {
    %c0_i32 = arith.constant 0 : i32
    %c0_i32_0 = arith.constant 0 : i32
    %c0_i32_1 = arith.constant 0 : i32
    return %c0_i32, %c0_i32_0 : i32, i32
  }
  func.func @transform_10(%arg0: i32, %arg1: i32, %arg2: i32) -> (i32, i32) {
    %c0_i32 = arith.constant 0 : i32
    %c0_i32_0 = arith.constant 0 : i32
    %c0_i32_1 = arith.constant 0 : i32
    return %c0_i32, %c0_i32_0 : i32, i32
  }
  func.func @transform_11(%arg0: i32, %arg1: i32, %arg2: i32) -> (i32, i32) {
    %c0_i32 = arith.constant 0 : i32
    %c0_i32_0 = arith.constant 0 : i32
    %c0_i32_1 = arith.constant 0 : i32
    return %c0_i32, %c0_i32_0 : i32, i32
  }
  func.func @transform_12(%arg0: i32, %arg1: i32, %arg2: i32) -> (i32, i32, i32) {
    %c0_i32 = arith.constant 0 : i32
    %c0_i32_0 = arith.constant 0 : i32
    return %arg0, %arg1, %c0_i32 : i32, i32, i32
  }
}

module attributes {stable_mosaic.version = 11 : i64} {
  func.func @_ffn_ln_kernel(%arg0: i32, %arg1: memref<16x32xf32, #tpu.memory_space<vmem>>, %arg2: memref<32x128xbf16, #tpu.memory_space<vmem>>, %arg3: memref<1x128xf32, #tpu.memory_space<vmem>>, %arg4: memref<128x32xbf16, #tpu.memory_space<vmem>>, %arg5: memref<1x32xf32, #tpu.memory_space<vmem>>, %arg6: memref<1x32xf32, #tpu.memory_space<vmem>>, %arg7: memref<1x32xf32, #tpu.memory_space<vmem>>, %arg8: memref<16x32xf32, #tpu.memory_space<vmem>>) attributes {dimension_semantics = [#tpu.dimension_semantics<parallel>], iteration_bounds = array<i64: 1>, scalar_prefetch = 0 : i64, scratch_operands = 0 : i64, tpu.core_type = #tpu.core_type<tc>, window_params = [{transform_indices = @transform_0, window_bounds = array<i64: 16, 32>}, {pipeline_mode = #tpu.pipeline_mode<synchronous>, transform_indices = @transform_1, window_bounds = array<i64: 32, 128>}, {pipeline_mode = #tpu.pipeline_mode<synchronous>, transform_indices = @transform_2, window_bounds = array<i64: 1, 128>}, {pipeline_mode = #tpu.pipeline_mode<synchronous>, transform_indices = @transform_3, window_bounds = array<i64: 128, 32>}, {pipeline_mode = #tpu.pipeline_mode<synchronous>, transform_indices = @transform_4, window_bounds = array<i64: 1, 32>}, {pipeline_mode = #tpu.pipeline_mode<synchronous>, transform_indices = @transform_5, window_bounds = array<i64: 1, 32>}, {pipeline_mode = #tpu.pipeline_mode<synchronous>, transform_indices = @transform_6, window_bounds = array<i64: 1, 32>}, {transform_indices = @transform_7, window_bounds = array<i64: 16, 32>}]} {
    %c0 = arith.constant 0 : index
    %c0_0 = arith.constant 0 : index
    %0 = vector.load %arg1[%c0, %c0_0] : memref<16x32xf32, #tpu.memory_space<vmem>>, vector<16x32xf32>
    %1 = arith.truncf %0 : vector<16x32xf32> to vector<16x32xbf16>
    %c0_1 = arith.constant 0 : index
    %c0_2 = arith.constant 0 : index
    %2 = vector.load %arg2[%c0_1, %c0_2] : memref<32x128xbf16, #tpu.memory_space<vmem>>, vector<32x128xbf16>
    %cst = arith.constant dense<0.000000e+00> : vector<16x128xf32>
    %3 = tpu.matmul %1, %2, %cst {dimension_numbers = #tpu.dot_dimension_numbers<[1], [0], [0], [1], [0, 0, 1, 1], [], []>} : vector<16x32xbf16>, vector<32x128xbf16>, vector<16x128xf32> -> vector<16x128xf32>
    %c0_3 = arith.constant 0 : index
    %c0_4 = arith.constant 0 : index
    %4 = vector.load %arg3[%c0_3, %c0_4] : memref<1x128xf32, #tpu.memory_space<vmem>>, vector<1x128xf32>
    %5 = vector.broadcast %4 : vector<1x128xf32> to vector<16x128xf32>
    %6 = arith.addf %3, %5 : vector<16x128xf32>
    %cst_5 = arith.constant 0.000000e+00 : f32
    %7 = vector.broadcast %cst_5 : f32 to vector<16x128xf32>
    %8 = arith.maximumf %6, %7 : vector<16x128xf32>
    %9 = arith.truncf %8 : vector<16x128xf32> to vector<16x128xbf16>
    %c0_6 = arith.constant 0 : index
    %c0_7 = arith.constant 0 : index
    %10 = vector.load %arg4[%c0_6, %c0_7] : memref<128x32xbf16, #tpu.memory_space<vmem>>, vector<128x32xbf16>
    %cst_8 = arith.constant dense<0.000000e+00> : vector<16x32xf32>
    %11 = tpu.matmul %9, %10, %cst_8 {dimension_numbers = #tpu.dot_dimension_numbers<[1], [0], [0], [1], [0, 0, 1, 1], [], []>} : vector<16x128xbf16>, vector<128x32xbf16>, vector<16x32xf32> -> vector<16x32xf32>
    %c0_9 = arith.constant 0 : index
    %c0_10 = arith.constant 0 : index
    %12 = vector.load %arg5[%c0_9, %c0_10] : memref<1x32xf32, #tpu.memory_space<vmem>>, vector<1x32xf32>
    %13 = vector.broadcast %12 : vector<1x32xf32> to vector<16x32xf32>
    %14 = arith.addf %11, %13 : vector<16x32xf32>
    %15 = arith.addf %14, %0 : vector<16x32xf32>
    %cst_11 = arith.constant dense<0.000000e+00> : vector<16xf32>
    %16 = vector.multi_reduction <add>, %15, %cst_11 [1] : vector<16x32xf32> to vector<16xf32>
    %17 = vector.shape_cast %16 : vector<16xf32> to vector<16x1xf32>
    %cst_12 = arith.constant 3.200000e+01 : f32
    %18 = vector.broadcast %cst_12 : f32 to vector<16x1xf32>
    %19 = arith.divf %17, %18 : vector<16x1xf32>
    %20 = vector.broadcast %19 : vector<16x1xf32> to vector<16x32xf32>
    %21 = arith.subf %15, %20 : vector<16x32xf32>
    %22 = arith.mulf %21, %21 : vector<16x32xf32>
    %cst_13 = arith.constant dense<0.000000e+00> : vector<16xf32>
    %23 = vector.multi_reduction <add>, %22, %cst_13 [1] : vector<16x32xf32> to vector<16xf32>
    %24 = vector.shape_cast %23 : vector<16xf32> to vector<16x1xf32>
    %cst_14 = arith.constant 3.200000e+01 : f32
    %25 = vector.broadcast %cst_14 : f32 to vector<16x1xf32>
    %26 = arith.divf %24, %25 : vector<16x1xf32>
    %27 = vector.broadcast %19 : vector<16x1xf32> to vector<16x32xf32>
    %28 = arith.subf %15, %27 : vector<16x32xf32>
    %cst_15 = arith.constant 9.99999974E-6 : f32
    %29 = vector.broadcast %cst_15 : f32 to vector<16x1xf32>
    %30 = arith.addf %26, %29 : vector<16x1xf32>
    %31 = math.rsqrt %30 : vector<16x1xf32>
    %32 = vector.broadcast %31 : vector<16x1xf32> to vector<16x32xf32>
    %33 = arith.mulf %28, %32 : vector<16x32xf32>
    %c0_16 = arith.constant 0 : index
    %c0_17 = arith.constant 0 : index
    %34 = vector.load %arg6[%c0_16, %c0_17] : memref<1x32xf32, #tpu.memory_space<vmem>>, vector<1x32xf32>
    %35 = vector.broadcast %34 : vector<1x32xf32> to vector<16x32xf32>
    %36 = arith.mulf %33, %35 : vector<16x32xf32>
    %c0_18 = arith.constant 0 : index
    %c0_19 = arith.constant 0 : index
    %37 = vector.load %arg7[%c0_18, %c0_19] : memref<1x32xf32, #tpu.memory_space<vmem>>, vector<1x32xf32>
    %38 = vector.broadcast %37 : vector<1x32xf32> to vector<16x32xf32>
    %39 = arith.addf %36, %38 : vector<16x32xf32>
    %c0_20 = arith.constant 0 : index
    %c0_21 = arith.constant 0 : index
    %40 = vector.load %arg8[%c0_20, %c0_21] : memref<16x32xf32, #tpu.memory_space<vmem>>, vector<16x32xf32>
    tpu.vector_store %arg8[%c0_20, %c0_21], %39 {strides = array<i32>} : memref<16x32xf32, #tpu.memory_space<vmem>>, vector<16x32xf32>,
    return
  }
  func.func @transform_0(%arg0: i32) -> (i32, i32) {
    %c0_i32 = arith.constant 0 : i32
    %c0_i32_0 = arith.constant 0 : i32
    return %arg0, %c0_i32 : i32, i32
  }
  func.func @transform_1(%arg0: i32) -> (i32, i32) {
    %c0_i32 = arith.constant 0 : i32
    %c0_i32_0 = arith.constant 0 : i32
    %c0_i32_1 = arith.constant 0 : i32
    return %c0_i32, %c0_i32_0 : i32, i32
  }
  func.func @transform_2(%arg0: i32) -> (i32, i32) {
    %c0_i32 = arith.constant 0 : i32
    %c0_i32_0 = arith.constant 0 : i32
    %c0_i32_1 = arith.constant 0 : i32
    return %c0_i32, %c0_i32_0 : i32, i32
  }
  func.func @transform_3(%arg0: i32) -> (i32, i32) {
    %c0_i32 = arith.constant 0 : i32
    %c0_i32_0 = arith.constant 0 : i32
    %c0_i32_1 = arith.constant 0 : i32
    return %c0_i32, %c0_i32_0 : i32, i32
  }
  func.func @transform_4(%arg0: i32) -> (i32, i32) {
    %c0_i32 = arith.constant 0 : i32
    %c0_i32_0 = arith.constant 0 : i32
    %c0_i32_1 = arith.constant 0 : i32
    return %c0_i32, %c0_i32_0 : i32, i32
  }
  func.func @transform_5(%arg0: i32) -> (i32, i32) {
    %c0_i32 = arith.constant 0 : i32
    %c0_i32_0 = arith.constant 0 : i32
    %c0_i32_1 = arith.constant 0 : i32
    return %c0_i32, %c0_i32_0 : i32, i32
  }
  func.func @transform_6(%arg0: i32) -> (i32, i32) {
    %c0_i32 = arith.constant 0 : i32
    %c0_i32_0 = arith.constant 0 : i32
    %c0_i32_1 = arith.constant 0 : i32
    return %c0_i32, %c0_i32_0 : i32, i32
  }
  func.func @transform_7(%arg0: i32) -> (i32, i32) {
    %c0_i32 = arith.constant 0 : i32
    %c0_i32_0 = arith.constant 0 : i32
    return %arg0, %c0_i32 : i32, i32
  }
}

</mosaic_0001>

<bundles_post_ra>
// kernel: decoder_block_forward.3
= control target key start
LH: loop header
LB: loop body
LE: loop exit
PB: predicated region body
PF: predicated region fallthrough
CT: control target
= control target key end

     0   :  { %s1457_s21 = smov 0   ;;  %s1459_s22 = smov 0   ;;  %s1613_s0 = inlined_call_operand.vmem [shape: f32[2,8,32], index: 0, kind: input, shape index: {}, may-alias: {0,1,2,3}]   ;;  %s1614_s1 = inlined_call_operand.vmem [shape: f32[2,8,32], index: 1, kind: input, shape index: {}, may-alias: {0,1,2,3}]   ;;  %s1615_s2 = inlined_call_operand.vmem [shape: f32[2,8,32], index: 2, kind: input, shape index: {}, may-alias: {0,1,2,3}]   ;;  %s1616_s3 = inlined_call_operand.vmem [shape: f32[2,8,32], index: 3, kind: input, shape index: {}, may-alias: {0,1,2,3}]   ;;  %s1617_s4 = inlined_call_operand.vmem [shape: f32[2,1,8,8], index: 4, kind: input, shape index: {}]   ;;  %s1618_s5 = inlined_call_operand.vmem [shape: bf16[4,32,8], index: 5, kind: input, shape index: {}]   ;;  %s1619_s6 = inlined_call_operand.vmem [shape: bf16[4,32,8], index: 6, kind: input, shape index: {}]   ;;  %s1620_s7 = inlined_call_operand.vmem [shape: bf16[4,32,8], index: 7, kind: input, shape index: {}]   ;;  %s1621_s8 = inlined_call_operand.vmem [shape: bf16[4,8,32], index: 8, kind: input, shape index: {}]   ;;  %s1622_s9 = inlined_call_operand.vmem [shape: f32[1,32], index: 9, kind: input, shape index: {}]   ;;  %s1623_s10 = inlined_call_operand.vmem [shape: f32[1,32], index: 10, kind: input, shape index: {}]   ;;  %s1624_s11 = inlined_call_operand.vmem [shape: f32[1,32], index: 11, kind: input, shape index: {}]   ;;  %s1625_s12 = inlined_call_operand.vmem [shape: f32[2,8,32], index: 12, kind: output, shape index: {}]  }
   0x1   :  { %1629 = sst [smem:[#allocation8_spill]] %s1623_s10  ;;  %s1461_s23 = smov 0  }
   0x2   :  { %1630 = sst [smem:[#allocation9_spill]] %s1624_s11  ;;  %s1463_s24 = smov 0  }
   0x3   :  { %s1465_s25 = smov 0  }
   0x4 LB: > { %1631 = sst [smem:[#allocation3_spill]] %s1379_s23  ;;  %s34_s26 = sadd.s32 1, %s1379_s23  ;;  %s1387_s25 = sphi %s1465_s25, %s22_s25   ;;  %s1383_s24 = sphi %s1463_s24, %s1646_s24   ;;  %s1379_s23 = sphi %s1461_s23, %s1645_s23   ;;  %s1375_s22 = sphi %s1459_s22, %s1644_s22   ;;  %s1371_s21 = sphi %s1457_s21, %s1643_s21  }
   0x5   : > { %1632 = sst [smem:[#allocation4_spill]] %s1383_s24  ;;  %s41_s27 = sadd.s32 1, %s1383_s24 }
   0x6   : > { %1633 = sst [smem:[#allocation5_spill]] %s1387_s25  ;;  %p35_p0 = scmp.ge.s32.totalorder %s34_s26, 4 }
   0x7   : > { %p1201_p1 = scmp.ge.s32.totalorder %s1387_s25, 1  ;;  %p472_p2 = scmp.lt.s32.totalorder %s1387_s25, 9 }
   0x8   : > { %s1648_s26 = smov (%p35_p0, %s34_s26), 0  ;;  %s1650_s27 = smov (!%p35_p0, %s41_s27), %s1383_s24 }
   0x9   : > { %1634 = sst [smem:[#allocation6_spill]] %s1648_s26  ;;  %p473_p3 = pnand %p1201_p1, %p472_p2 }
   0xa   : > { %p43_p4 = scmp.ge.s32.totalorder %s1650_s27, 2  ;;  %p559_p5 = scmp.lt.s32.totalorder (!%p473_p3), %s1375_s22, 1 }
   0xb   : > { %476 = sbr.rel (%p473_p3) target bundleno = 1459 (0x5b3), region = 68  ;;  %p588_p6 = scmp.lt.s32.totalorder (!%p473_p3), %s1371_s21, 3 }
   0xc   : > { %s1652_s27 = smov (%p43_p4, %s1650_s27), 0  ;;  %p1215_p7 = scmp.ne.s32.totalorder (!%p473_p3), %s1371_s21, 0 }
   0xd   : > { %1635 = sst [smem:[#allocation7_spill]] %s1652_s27 }
  0x10   : > { %s1654_s22 = smov (!%p559_p5, %s1375_s22), 1 }
  0x11   : > { %s589_s28 = scalar_select %p588_p6, %s1371_s21, 3 }
  0x12   : > { %s1491_s29 = sshll.u32 %s1654_s22, 3  ;;  %618 = sbr.rel (%p1215_p7) target bundleno = 25 (0x19), region = 72 }
  0x13   : > { %s573_s20 = scalar_lea.vmem %s1615_s2, %s1491_s29  ;;  %s1234_s23 = sshll.u32 %s589_s28, 4 }
  0x14   : > { %s592_s14 = scalar_lea.vmem %s1618_s5, %s1234_s23  ;;  %s597_s16 = scalar_lea.vmem %s1619_s6, %s1234_s23 }
  0x15   : > { %s1522_s19 = scalar_lea.vmem %s1620_s7, %s1234_s23  ;;  %s1213_s27 = sshll.u32 %s589_s28, 2 }
  0x16   : > { %s1527_s24 = scalar_lea.vmem %s1621_s8, %s1213_s27  ;;  %s613_s11 = scalar_lea.vmem %s1625_s12, %s1491_s29 }
  0x17   : > { %vm619_vm0 = vcmask 261120   ;;  %v1389_v0 = vmov 0.0  }
  0x18   : > { %620 = vst.msk [vmem:[#allocation2] sm:$0xff] %vm619_vm0, %v1389_v0 }
  0x19 PF: > { %v1337_v1 = vld [vmem:[%s592_s14 + $0x8] sm:$0xff]   ;;  %v1390_v2 = vmov 0.0   ;;  %v1339_v4 = vld [vmem:[%s592_s14] sm:$0xff]   ;;  %vm1391_vm1 = vmmov 0   ;;  %s1636_s25 = scalar_lea.vmem %s1613_s0, %s1491_s29  ;;  %s1637_s14 = scalar_lea.vmem %s1614_s1, %s1491_s29  ;;  %vm652_vm2 = vcmask 261120   ;;  %vm875_vm3 = vcmask 1043456  }
  0x1a   : > { %1252 = vmatprep.subr.bf16.mxu0 %v1390_v2  ;;  %1260 = vmatprep.subr.bf16.mxu1 %v1390_v2  ;;  %v1338_v3 = vld [vmem:[%s597_s16 + $0x8] sm:$0xff]   ;;  %v1340_v5 = vld [vmem:[%s597_s16] sm:$0xff]   ;;  %vm808_vm4 = vcmask 64512   ;;  %s1638_s16 = scalar_lea.vmem %s1617_s4, %s1491_s29  ;;  %p1228_p8 = scmp.ne.s32.totalorder %s1371_s21, 3 }
  0x1b   : > { %1253 = vmatpush3.bf16.msra.mxu0 %v1337_v1  ;;  %1256 = vmatprep.mubr.msk.bf16.mxu0 %vm1391_vm1, %v1390_v2  ;;  %v621_v6 = vld [vmem:[%s1636_s25] sm:$0xff]  ;;  %v1341_v10 = vld [vmem:[%s1522_s19 + $0x8] sm:$0xff]   ;;  %s1640_s10 = sld [smem:[#allocation8_spill]] (!%p1228_p8) }
  0x1c   : > { %1261 = vmatpush3.bf16.msra.mxu1 %v1338_v3  ;;  %1254 = vmatprep.subr.bf16.mxu0 %v1390_v2  ;;  %v623_v7 = vld [vmem:[%s1637_s14] sm:$0xff]  ;;  %v622_v8 = vpack.c.bf16 %v621_v6, %v621_v6  ;;  %s1641_s26 = sld [smem:[#allocation9_spill]] (!%p1228_p8) }
  0x1d   : > { %1262 = vmatprep.subr.bf16.mxu1 %v1390_v2  ;;  %1264 = vmatprep.mubr.msk.bf16.mxu1 %vm1391_vm1, %v1390_v2  ;;  %v624_v9 = vpack.c.bf16 %v623_v7, %v623_v7  ;;  %v1342_v11 = vld [vmem:[%s1522_s19] sm:$0xff]  }
  0x1e   : > { %v625_v12 = vld [vmem:[%s573_s20] sm:$0xff] }
  0x1f   : > { %1255 = vmatpush3.bf16.msra.mxu0 %v1339_v4  ;;  %v626_v13 = vpack.c.bf16 %v625_v12, %v625_v12  ;;  %v855_v31 = vld [vmem:[%s1638_s16] sm:$0xff] }
  0x20   : > { %1263 = vmatpush3.bf16.msra.mxu1 %v1340_v5  ;;  %1268 = vmatprep.subr.bf16.mxu0 %v1390_v2  ;;  %vm856_vm5 = vcmp.eq.f32.partialorder %v855_v31, 0.0  ;;  %v639_v44 = vld [vmem:[%s1527_s24] sm:$0xf]  ;;  %s1639_s24 = scalar_lea.vmem (!%p1228_p8), %s1616_s3, %s1491_s29 }
  0x21   : > { %1276 = vmatprep.subr.bf16.mxu1 %v1390_v2  ;;  %v925_v45 = vsel %vm875_vm3, %v639_v44, 0  ;;  %v919_v55 = vld [vmem:[#allocation2] sm:$0xff] }
  0x22   : > { %1257 = vmatmul.mubr.msk.bf16.vlgmr.msra.gmra.mxu0 %vm652_vm2, %v622_v8 }
  0x23   : > { %1265 = vmatmul.mubr.msk.bf16.vlgmr.msra.gmra.mxu1 %vm652_vm2, %v624_v9  ;;  %1269 = vmatpush3.bf16.msra.mxu0 %v1341_v10 }
  0x24   : > { %1270 = vmatprep.subr.bf16.mxu0 %v1390_v2  ;;  %1272 = vmatprep.mubr.msk.bf16.mxu0 %vm1391_vm1, %v1390_v2 }
  0x25   : > { %1278 = vmatprep.mubr.msk.bf16.mxu1 %vm1391_vm1, %v1390_v2 }
  0x27   : > { %1271 = vmatpush3.bf16.msra.mxu0 %v1342_v11 }
  0x28   : > { %1282 = vmatprep.subr.bf16.mxu0 %v1390_v2 }
  0x2a   : > { %1273 = vmatmul.mubr.msk.bf16.vlgmr.msra.gmra.mxu0 %vm652_vm2, %v626_v13 }
  0x2b   : > { %1284 = vmatprep.mubr.msk.bf16.mxu0 %vm1391_vm1, %v1390_v2 }
  0xe2   : > { %v690_v14 = vpop.f32.mrf.mxu0 }
  0xe3   : > { %v871_v15 = vpack.c.bf16 %v690_v14, %v690_v14  ;;  %v745_v16 = vpop.f32.mrf.mxu1 }
  0xe4   : > { %v807_v17 = vpack.c.bf16 %v745_v16, %v745_v16  ;;  %v1258_v18 = vpop.f32.mrf.mxu0 }
  0xe5   : > { %v877_v19 = vsel %vm875_vm3, %v871_v15, 0  ;;  %v1266_v20 = vpop.f32.mrf.mxu1 }
  0xe6   : > { %v813_v21 = vsel %vm808_vm4, %v807_v17, 0  ;;  %v693_v22 = vpop.f32.mrf.mxu0  ;;  %1283 = vmatpush3.bf16.msra.mxu0 %v877_v19 }
  0xe7   : > { %v748_v23 = vpop.f32.mrf.mxu1  ;;  %1277 = vmatpush3.bf16.xpose.msra.mxu1 %v813_v21 }
  0xe8   : > { %v1259_v24 = vpop.f32.mrf.mxu0  ;;  %1288 = vmatprep.subr.bf16.mxu1 %v1390_v2 }
  0xe9   : > { %v1267_v25 = vpop.f32.mrf.mxu1 }
  0xea   : > { %v800_v26 = vpop.f32.mrf.mxu0 }
  0xeb   : > { %v806_v27 = vpack.c.bf16 %v800_v26, %v800_v26 }
  0xec   : > { %v1274_v28 = vpop.f32.mrf.mxu0 }
  0xee   : > { %1279 = vmatmul.mubr.msk.bf16.vlgmr.msra.gmra.mxu1 %vm808_vm4, %v806_v27  ;;  %v803_v29 = vpop.f32.mrf.mxu0 }
  0xef   : > { %1290 = vmatprep.mubr.msk.bf16.mxu1 %vm1391_vm1, %v1390_v2  ;;  %1289 = vmatpush3.bf16.msra.mxu1 %v925_v45 }
  0xf0   : > { %v1275_v30 = vpop.f32.mrf.mxu0 }
 0x1ae   : > { %v849_v32 = vpop.f32.mrf.mxu1 }
 0x1af   : > { %v857_v33 = vsel %vm856_vm5, -1e-20, %v849_v32 }
 0x1b0   : > { %v858_v34 = vmul.f32 0.35355338, %v857_v33  ;;  %v1280_v35 = vpop.f32.mrf.mxu1 }
 0x1b2   : > { %v852_v36 = vpop.f32.mrf.mxu1  ;;  %v859_v37 = vsel %vm808_vm4, %v858_v34, -inf }
 0x1b3   : > { %860 = vmax.xlane.f32.xlu0 %v859_v37 }
 0x1b4   : > { %v1281_v38 = vpop.f32.mrf.mxu1 }
 0x23c   : > { %v861_v39 = vpop.xlane.xlu0 %860 }
 0x23d   : > { %v862_v40 = vsub.f32 %v858_v34, %v861_v39 }
 0x23f   : > { %v863_v41 = vmul.f32 1.442695, %v862_v40 }
 0x241   : > { %1343 = vpow2.f32 %v863_v41 }
 0x24e   : > { %v1344_v42 = vpop.eup %1343 }
 0x24f   : > { %v865_v43 = vsel %vm808_vm4, %v1344_v42, 0.0 }
 0x250   : > { %866 = vadd.xlane.f32.xlu0 %v865_v43 }
 0x2d9   : > { %v867_v46 = vpop.xlane.xlu0 %866 }
 0x2da   : > { %1345 = vrcp.f32 %v867_v46 }
 0x2e7   : > { %v1346_v47 = vpop.eup %1345 }
 0x2e8   : > { %v869_v48 = vmul.f32 %v1346_v47, %v1344_v42 }
 0x2ea   : > { %v870_v49 = vpack.c.bf16 %v869_v48, %v869_v48 }
 0x2ec   : > { %1285 = vmatmul.mubr.msk.bf16.vlgmr.msra.gmra.mxu0 %vm808_vm4, %v870_v49 }
 0x3ac   : > { %v913_v50 = vpop.f32.mrf.mxu0 }
 0x3ad   : > { %v920_v51 = vpack.c.bf16 %v913_v50, %v913_v50 }
 0x3ae   : > { %v1286_v52 = vpop.f32.mrf.mxu0 }
 0x3af   : > { %1291 = vmatmul.mubr.msk.bf16.vlgmr.msra.gmra.mxu1 %vm808_vm4, %v920_v51 }
 0x3b0   : > { %v916_v53 = vpop.f32.mrf.mxu0 }
 0x3b2   : > { %v1287_v54 = vpop.f32.mrf.mxu0 }
 0x46f   : > { %v961_v56 = vpop.f32.mrf.mxu1 }
 0x470   : > { %v967_v57 = vadd.f32 %v961_v56, %v919_v55 }
 0x471   : > { %v1292_v58 = vpop.f32.mrf.mxu1  ;;  %972 = sbr.rel (%p1228_p8) target bundleno = 1459 (0x5b3), region = 76 }
 0x472   : > { %968 = vst.msk [vmem:[#allocation2] sm:$0xff] %vm652_vm2, %v967_v57 }
 0x473   : > { %v964_v59 = vpop.f32.mrf.mxu1 }
 0x475   : > { %v1293_v60 = vpop.f32.mrf.mxu1 }
 0x476   : > { %v1229_v62 = vld [vmem:[%s1622_s9] ss:$0 sm:$0xff] }
 0x477   : > { %v982_v63 = vld [vmem:[%s1639_s24] sm:$0xff] }
 0x478   : > { %v1230_v12 = vld [vmem:[%s1640_s10] ss:$0 sm:$0xff] }
 0x479   : > { %v973_v61 = vld [vmem:[#allocation2] sm:$0xff] }
 0x47a   : > { %v981_v0 = vadd.f32 %v1229_v62, %v973_v61  ;;  %v1231_v14 = vld [vmem:[%s1641_s26] ss:$0 sm:$0xff] }
 0x47c   : > { %v983_v1 = vadd.f32 %v982_v63, %v981_v0 }
 0x47e   : > { %v984_v2 = vsel %vm652_vm2, %v983_v1, 0.0 }
 0x47f   : > { %985 = vadd.xlane.f32.xlu0 %v984_v2 }
 0x508   : > { %v986_v3 = vpop.xlane.xlu0 %985 }
 0x509   : > { %v988_v4 = vmul.f32 0.03125, %v986_v3 }
 0x50b   : > { %v989_v5 = vsub.f32 %v983_v1, %v988_v4 }
 0x50d   : > { %v990_v6 = vmul.f32 %v989_v5, %v989_v5 }
 0x50f   : > { %v991_v7 = vsel %vm652_vm2, %v990_v6, 0.0 }
 0x510   : > { %992 = vadd.xlane.f32.xlu0 %v991_v7 }
 0x599   : > { %v993_v8 = vpop.xlane.xlu0 %992 }
 0x59a   : > { %v994_v9 = vmul.f32 0.03125, %v993_v8 }
 0x59c   : > { %v995_v10 = vadd.f32 1e-05, %v994_v9 }
 0x59e   : > { %1347 = vrsqrt.f32 %v995_v10 }
 0x5ab   : > { %v1348_v11 = vpop.eup %1347 }
 0x5ac   : > { %v997_v13 = vmul.f32 %v1348_v11, %v989_v5 }
 0x5ae   : > { %v1005_v15 = vmul.f32 %v1230_v12, %v997_v13 }
 0x5b0   : > { %v1013_v16 = vadd.f32 %v1231_v14, %v1005_v15 }
 0x5b2   : > { %1014 = vst.msk [vmem:[%s613_s11] sm:$0xff] %vm652_vm2, %v1013_v16 }
 0x5b3 PF: > { %s1642_s17 = sld [smem:[#allocation5_spill]] }
 0x5b4   : > { %s1643_s21 = sld [smem:[#allocation3_spill]] }
 0x5b5   : > { %s1644_s22 = sld [smem:[#allocation4_spill]] }
 0x5b6   : > { %s1645_s23 = sld [smem:[#allocation6_spill]] }
 0x5b7   : > { %s1646_s24 = sld [smem:[#allocation7_spill]] }
 0x5b9   : > { %s22_s25 = sadd.s32 1, %s1642_s17  }
 0x5ba   : > { %p19_p9 = scmp.ge.s32.totalorder %s22_s25, 10  }
 0x5bc   :  { %21 = sbr.rel (!%p19_p9) target bundleno = 4 (0x4), region = 130 }

// kernel: decoder_block_forward.5
= control target key start
LH: loop header
LB: loop body
LE: loop exit
PB: predicated region body
PF: predicated region fallthrough
CT: control target
= control target key end

     0   :  { %v375_v1 = vmov 0.0   ;;  %vm376_vm0 = vmmov 0   ;;  %vm54_vm1 = vcmask 261120   ;;  %s478_s0 = inlined_call_operand.vmem [shape: f32[16,32], index: 0, kind: input, shape index: {}]   ;;  %s479_s1 = inlined_call_operand.vmem [shape: bf16[32,128], index: 1, kind: input, shape index: {}]   ;;  %s480_s2 = inlined_call_operand.vmem [shape: f32[1,128], index: 2, kind: input, shape index: {}]   ;;  %s481_s3 = inlined_call_operand.vmem [shape: bf16[128,32], index: 3, kind: input, shape index: {}]   ;;  %s482_s4 = inlined_call_operand.vmem [shape: f32[1,32], index: 4, kind: input, shape index: {}]   ;;  %s483_s5 = inlined_call_operand.vmem [shape: f32[1,32], index: 5, kind: input, shape index: {}]   ;;  %s484_s6 = inlined_call_operand.vmem [shape: f32[1,32], index: 6, kind: input, shape index: {}]   ;;  %s485_s7 = inlined_call_operand.hbm [shape: f32[16,32], index: 7, kind: output, shape index: {}]  }
   0x1   :  { %v339_v0 = vld [vmem:[%s479_s1 + $0x8] sm:$0xff]   ;;  %306 = vmatprep.subr.bf16.mxu0 %v375_v1  ;;  %v340_v2 = vld [vmem:[%s479_s1] sm:$0xff]   ;;  %314 = vmatprep.subr.bf16.mxu1 %v375_v1  ;;  %v341_v5 = vld [vmem:[%s481_s3 + $0x38] sm:$0xff]  }
   0x2   :  { %307 = vmatpush3.bf16.msra.mxu0 %v339_v0  ;;  %310 = vmatprep.mubr.msk.bf16.mxu0 %vm376_vm0, %v375_v1  ;;  %v28_v3 = vld [vmem:[%s478_s0] sm:$0xff]  ;;  %v29_v4 = vld [vmem:[%s478_s0 + $0x8] sm:$0xff]  ;;  %v342_v7 = vld [vmem:[%s481_s3 + $0x30] sm:$0xff]  }
   0x3   :  { %308 = vmatprep.subr.bf16.mxu0 %v375_v1  ;;  %330 = vmatprep.mubr.msk.bf16.mxu1 %vm376_vm0, %v375_v1  ;;  %v30_v6 = vpack.c.bf16 %v29_v4, %v28_v3  ;;  %v343_v8 = vld [vmem:[%s481_s3 + $0x28] sm:$0xff]  }
   0x4   :  { %315 = vmatpush3.bf16.msra.mxu1 %v341_v5 }
   0x5   :  { %316 = vmatprep.subr.bf16.mxu1 %v375_v1 }
   0x6   :  { %309 = vmatpush3.bf16.msra.mxu0 %v340_v2 }
   0x8   :  { %317 = vmatpush3.bf16.msra.mxu1 %v342_v7 }
   0x9   :  { %311 = vmatmul.mubr.msk.bf16.vlgmr.msra.gmra.mxu0 %vm54_vm1, %v30_v6  ;;  %318 = vmatprep.subr.bf16.mxu1 %v375_v1 }
   0xa   :  { %12 = vsyncpa [#allocation3], 0  ;;  %v344_v9 = vld [vmem:[%s481_s3 + $0x20] sm:$0xff]   ;;  %v345_v10 = vld [vmem:[%s481_s3 + $0x18] sm:$0xff]   ;;  %s377_s28 = smov [#allocation2]  }
   0xb   :  { %v346_v11 = vld [vmem:[%s481_s3 + $0x10] sm:$0xff]   ;;  %v347_v12 = vld [vmem:[%s481_s3 + $0x8] sm:$0xff]   ;;  %v348_v13 = vld [vmem:[%s481_s3] sm:$0xff]   ;;  %s268_s29 = sshll.u32 %s377_s28, 4  ;;  %s269_s29 = int_to_ptr.vmem [resolvable:$true] %s268_s29 }
   0xc   :  { %319 = vmatpush3.bf16.msra.mxu1 %v343_v8  ;;  %v279_v14 = vld [vmem:[%s480_s2] ss:$0 sm:$0xff]  ;;  %s353_s30 = scalar_lea.vmem %s269_s29, 256  ;;  %p358_p1 = scmp.lt.s32.totalorder %s269_s29, %s269_s29 }
   0xd   :  { %320 = vmatprep.subr.bf16.mxu1 %v375_v1  ;;  %v283_v24 = vld [vmem:[%s482_s4] ss:$0 sm:$0xff]  ;;  %p354_p0 = scmp.ne.s32.totalorder %s269_s29, %s353_s30  ;;  %p359_p2 = scmp.lt.s32.totalorder %s353_s30, %s353_s30 }
   0xe   :  { %v292_v52 = vld [vmem:[%s483_s5] ss:$0 sm:$0xff] }
   0xf   :  { %v293_v54 = vld [vmem:[%s484_s6] ss:$0 sm:$0xff]  ;;  %p360_p3 = por %p359_p2, %p358_p1 }
  0x10   :  { %321 = vmatpush3.bf16.msra.mxu1 %v344_v9 }
  0x11   :  { %322 = vmatprep.subr.bf16.mxu1 %v375_v1  ;;  %p361_p4 = pnand %p360_p3, %p354_p0 }
  0x14   :  { %323 = vmatpush3.bf16.msra.mxu1 %v345_v10 }
  0x15   :  { %324 = vmatprep.subr.bf16.mxu1 %v375_v1 }
  0x18   :  { %325 = vmatpush3.bf16.msra.mxu1 %v346_v11 }
  0x19   :  { %326 = vmatprep.subr.bf16.mxu1 %v375_v1 }
  0x1c   :  { %327 = vmatpush3.bf16.msra.mxu1 %v347_v12 }
  0x1d   :  { %328 = vmatprep.subr.bf16.mxu1 %v375_v1 }
  0x20   :  { %329 = vmatpush3.bf16.msra.mxu1 %v348_v13 }
  0xc9   :  { %v92_v15 = vpop.f32.mrf.mxu0 }
  0xca   :  { %v93_v17 = vadd.f32 %v279_v14, %v92_v15 }
  0xcb   :  { %v312_v16 = vpop.f32.mrf.mxu0 }
  0xcc   :  { %v99_v21 = vmax.f32 %v93_v17, 0.0 }
  0xcd   :  { %v95_v18 = vpop.f32.mrf.mxu0 }
  0xce   :  { %v96_v19 = vadd.f32 %v279_v14, %v95_v18 }
  0xcf   :  { %v313_v20 = vpop.f32.mrf.mxu0 }
  0xd0   :  { %v100_v22 = vmax.f32 %v96_v19, 0.0 }
  0xd2   :  { %v101_v23 = vpack.c.bf16 %v100_v22, %v99_v21 }
  0xd4   :  { %331 = vmatmul.mubr.bf16.vlgmr.msra.gmra.mxu1 %v101_v23 }
 0x194   :  { %v207_v25 = vpop.f32.mrf.mxu1 }
 0x195   :  { %v208_v26 = vadd.f32 %v283_v24, %v207_v25 }
 0x196   :  { %v332_v27 = vpop.f32.mrf.mxu1 }
 0x197   :  { %v214_v28 = vadd.f32 %v208_v26, %v28_v3 }
 0x198   :  { %v210_v29 = vpop.f32.mrf.mxu1 }
 0x199   :  { %v211_v30 = vadd.f32 %v283_v24, %v210_v29  ;;  %v216_v31 = vsel %vm54_vm1, %v214_v28, 0.0 }
 0x19a   :  { %217 = vadd.xlane.f32.xlu0 %v216_v31  ;;  %v333_v32 = vpop.f32.mrf.mxu1 }
 0x19b   :  { %v215_v33 = vadd.f32 %v211_v30, %v29_v4 }
 0x19d   :  { %v219_v34 = vsel %vm54_vm1, %v215_v33, 0.0 }
 0x19e   :  { %220 = vadd.xlane.f32.xlu0 %v219_v34 }
 0x223   :  { %v218_v35 = vpop.xlane.xlu0 %217 }
 0x224   :  { %v223_v36 = vmul.f32 0.03125, %v218_v35 }
 0x226   :  { %v225_v37 = vsub.f32 %v214_v28, %v223_v36 }
 0x227   :  { %v221_v38 = vpop.xlane.xlu0 %220 }
 0x228   :  { %v224_v39 = vmul.f32 0.03125, %v221_v38  ;;  %v227_v40 = vmul.f32 %v225_v37, %v225_v37 }
 0x22a   :  { %v226_v41 = vsub.f32 %v215_v33, %v224_v39  ;;  %v229_v42 = vsel %vm54_vm1, %v227_v40, 0.0 }
 0x22b   :  { %230 = vadd.xlane.f32.xlu1 %v229_v42 }
 0x22c   :  { %v228_v43 = vmul.f32 %v226_v41, %v226_v41 }
 0x22e   :  { %v232_v44 = vsel %vm54_vm1, %v228_v43, 0.0 }
 0x22f   :  { %233 = vadd.xlane.f32.xlu1 %v232_v44 }
 0x2b4   :  { %v231_v45 = vpop.xlane.xlu1 %230 }
 0x2b5   :  { %v235_v46 = vmul.f32 0.03125, %v231_v45 }
 0x2b7   :  { %v237_v47 = vadd.f32 1e-05, %v235_v46 }
 0x2b8   :  { %v234_v48 = vpop.xlane.xlu1 %233 }
 0x2b9   :  { %349 = vrsqrt.f32 %v237_v47  ;;  %v236_v49 = vmul.f32 0.03125, %v234_v48 }
 0x2bb   :  { %v238_v50 = vadd.f32 1e-05, %v236_v49 }
 0x2bd   :  { %351 = vrsqrt.f32 %v238_v50 }
 0x2c6   :  { %v350_v51 = vpop.eup %349 }
 0x2c7   :  { %v241_v53 = vmul.f32 %v350_v51, %v225_v37 }
 0x2c9   :  { %v250_v55 = vmul.f32 %v292_v52, %v241_v53 }
 0x2ca   :  { %v352_v56 = vpop.eup %351 }
 0x2cb   :  { %v242_v57 = vmul.f32 %v352_v56, %v226_v41  ;;  %v259_v58 = vadd.f32 %v293_v54, %v250_v55 }
 0x2cd   :  { %v251_v59 = vmul.f32 %v292_v52, %v242_v57  ;;  %261 = vst.msk [vmem:[#allocation2] sm:$0xff] %vm54_vm1, %v259_v58 }
 0x2cf   :  { %v260_v60 = vadd.f32 %v293_v54, %v251_v59 }
 0x2d1   :  { %262 = vst.msk [vmem:[#allocation2 + $0x8] sm:$0xff] %vm54_vm1, %v260_v60 }
 0x2d2   :  { %364 = shalt.err (!%p361_p4)
}
 0x2d3   :  { %s378_s5 = smov 128   ;;  %s379_s6 = smov 8  }
 0x2d4   :  { %274 = dma.vmem_to_hbm [thread:$0]  %s269_s29, 256, %s485_s7, [#allocation3], %s378_s5, %s378_s5, %s379_s6  }
 0x2d5   :  { %373 = dma.done.wait [#allocation3], 256  }
 0x2d6   :  { %374 = vsyncadd [#allocation3], 4294967040 }
 0x2d7   :  { %278 = vsyncpa [#allocation3], 1 }

</bundles_post_ra>
